<compile_context>
chip_gen: v7x
topology: tpu7x:2x2x1
jax: 0.10.0
libtpu: 0.0.40
codegen_flags: <defaults>
</compile_context>

<pallas_src>
import functools

import jax
import jax.numpy as jnp
from jax.experimental import pallas as pl
from jax.experimental.pallas import tpu as pltpu

EPS = 1e-5  # nn.LayerNorm default


def _layer_norm(x, gamma, beta):
    mu = jnp.mean(x, axis=-1, keepdims=True)
    var = jnp.mean((x - mu) ** 2, axis=-1, keepdims=True)
    return (x - mu) * jax.lax.rsqrt(var + EPS) * gamma + beta


# ----------------------------------------------------------------------------
# Fused kernel: one pre-LN transformer encoder layer, whole batch in one step.
# ----------------------------------------------------------------------------
def encoder_layer_kernel(x_ref,
                         ln1_g_ref, ln1_b_ref,
                         w_qkv_ref, b_qkv_ref,
                         wo_ref, bo_ref,
                         ln2_g_ref, ln2_b_ref,
                         w1_ref, b1_ref, w2_ref, b2_ref,
                         o_ref, *, num_heads):
    B, S, E = x_ref.shape
    H = num_heads
    dh = E // H
    N = B * S
    scale = float(dh) ** -0.5
    mm = jnp.bfloat16  # MXU operand dtype; accumulation / statistics stay f32

    x = x_ref[...].astype(jnp.float32).reshape(N, E)            # token-major (B*S, E)

    # ---------------- multi-head self-attention (pre-LN) ----------------
    x_res = x
    h = _layer_norm(x, ln1_g_ref[...], ln1_b_ref[...])          # (N, E) f32

    # One lane-dense QKV matmul: (N, E) @ (E, 3E), f32 accumulation + bias.
    qkv = jnp.dot(h.astype(mm), w_qkv_ref[...],
                  preferred_element_type=jnp.float32) + b_qkv_ref[...]   # (N, 3E)
    qkv = qkv.reshape(B, S, 3 * E)                              # leading-dim split only

    def heads(base):
        # Static lane slices per head -> (H*B, S, dh); batch index n = hd*B + b.
        parts = [qkv[:, :, base + hd * dh: base + (hd + 1) * dh]
                 for hd in range(H)]
        return jnp.concatenate(parts, axis=0).astype(mm)

    q = heads(0)            # (H*B, S, dh) bf16
    k = heads(E)
    v = heads(2 * E)

    s = jnp.einsum('nqd,nkd->nqk', q, k,
                   preferred_element_type=jnp.float32) * scale  # (H*B, S, S) f32
    s = s - jnp.max(s, axis=-1, keepdims=True)
    p = jnp.exp(s)
    p = p * pl.reciprocal(jnp.sum(p, axis=-1, keepdims=True), approx=True)

    ctx = jnp.einsum('nqk,nkd->nqd', p.astype(mm), v,
                     preferred_element_type=jnp.float32)        # (H*B, S, dh) f32
    # Merge heads back into the lane dim: columns ordered [head0 | head1 | ...].
    ctx = jnp.concatenate([ctx[hd * B:(hd + 1) * B] for hd in range(H)],
                          axis=-1)                              # (B, S, E)
    ctx = ctx.reshape(N, E)

    # Output projection: head reduction folded into the single (E, E) contraction.
    attn = jnp.dot(ctx.astype(mm), wo_ref[...],
                   preferred_element_type=jnp.float32) + bo_ref[...]     # (N, E)
    x = attn + x_res

    # ------------------------ feed-forward (pre-LN) ---------------------
    x_res = x
    h = _layer_norm(x, ln2_g_ref[...], ln2_b_ref[...])
    h = jnp.dot(h.astype(mm), w1_ref[...],
                preferred_element_type=jnp.float32) + b1_ref[...]        # (N, hidden)
    h = jnp.maximum(h, 0.0)
    h = jnp.dot(h.astype(mm), w2_ref[...],
                preferred_element_type=jnp.float32) + b2_ref[...]        # (N, E)
    x = h + x_res

    o_ref[...] = x.reshape(B, S, E).astype(o_ref.dtype)
    # TODO(synk): at real sizes (E a multiple of 128, large S / hidden) stores
    # become lane-dense automatically; also tile the kv axis (online softmax)
    # and the FFN hidden dim, and set vmem_limit_bytes explicitly
    # (v7x: 64 MiB physical / 32 MiB default scoped; v5e default is 16 MiB).


# ----------------------------------------------------------------------------
# Wrapper: one fused pallas_call, no grid (everything fits VMEM at these sizes).
# ----------------------------------------------------------------------------
def transformer_encoder_layer(x, params, num_heads=4):
    B, S, E = x.shape
    weights = (params["ln1_g"], params["ln1_b"],
               params["w_qkv"], params["b_qkv"],
               params["wo"], params["bo"],
               params["ln2_g"], params["ln2_b"],
               params["w1"], params["b1"], params["w2"], params["b2"])
    n_in = 1 + len(weights)
    return pl.pallas_call(
        functools.partial(encoder_layer_kernel, num_heads=num_heads),
        out_shape=jax.ShapeDtypeStruct((B, S, E), jnp.float32),
        in_specs=[pl.BlockSpec(memory_space=pltpu.MemorySpace.VMEM)
                  for _ in range(n_in)],
        out_specs=pl.BlockSpec(memory_space=pltpu.MemorySpace.VMEM),
    )(x, *weights)


# ----------------------------------------------------------------------------
# Parameters: PyTorch-convention tensors, pre-arranged once on the host into
# kernel-friendly "activation @ weight" layouts (weights stored in bf16).
# ----------------------------------------------------------------------------
def init_torch_style_params(key, emb_dim, hidden_dim):
    def normal(k, shape, s=0.02):
        return jax.random.normal(k, shape, dtype=jnp.float32) * s

    ks = jax.random.split(key, 7)
    return dict(
        in_proj_weight=normal(ks[0], (3 * emb_dim, emb_dim)),   # (3E, E) (out, in)
        in_proj_bias=normal(ks[1], (3 * emb_dim,)),
        out_proj_weight=normal(ks[2], (emb_dim, emb_dim)),      # (E, E)  (out, in)
        out_proj_bias=normal(ks[3], (emb_dim,)),
        ln1_weight=jnp.ones((emb_dim,), jnp.float32),
        ln1_bias=jnp.zeros((emb_dim,), jnp.float32),
        ln2_weight=jnp.ones((emb_dim,), jnp.float32),
        ln2_bias=jnp.zeros((emb_dim,), jnp.float32),
        lin1_weight=normal(ks[4], (hidden_dim, emb_dim)),       # (hidden, E)
        lin1_bias=normal(ks[5], (hidden_dim,)),
        lin2_weight=normal(ks[6], (emb_dim, hidden_dim)),       # (E, hidden)
        lin2_bias=jnp.zeros((emb_dim,), jnp.float32),
    )


def prepare_params(tp, emb_dim, num_heads):
    E = emb_dim
    return dict(
        ln1_g=tp["ln1_weight"].reshape(1, E),
        ln1_b=tp["ln1_bias"].reshape(1, E),
        w_qkv=tp["in_proj_weight"].T.astype(jnp.bfloat16),      # (E, 3E)
        b_qkv=tp["in_proj_bias"].reshape(1, 3 * E),             # f32
        wo=tp["out_proj_weight"].T.astype(jnp.bfloat16),        # (E, E)
        bo=tp["out_proj_bias"].reshape(1, E),                   # f32
        ln2_g=tp["ln2_weight"].reshape(1, E),
        ln2_b=tp["ln2_bias"].reshape(1, E),
        w1=tp["lin1_weight"].T.astype(jnp.bfloat16),            # (E, hidden)
        b1=tp["lin1_bias"].reshape(1, -1),                      # f32
        w2=tp["lin2_weight"].T.astype(jnp.bfloat16),            # (hidden, E)
        b2=tp["lin2_bias"].reshape(1, E),                       # f32
    )


# ----------------------------------------------------------------------------
# Pure-JAX f32 reference (mirrors the PyTorch forward exactly) for verification.
# ----------------------------------------------------------------------------
def reference_forward(x, tp, num_heads):
    E = x.shape[-1]
    H = num_heads
    dh = E // H

    def ln(v, g, b):
        mu = v.mean(-1, keepdims=True)
        var = ((v - mu) ** 2).mean(-1, keepdims=True)
        return (v - mu) / jnp.sqrt(var + EPS) * g + b

    def one(xb):  # (S, E)
        x_res = xb
        h = ln(xb, tp["ln1_weight"], tp["ln1_bias"])
        qkv = h @ tp["in_proj_weight"].T + tp["in_proj_bias"]
        q, k, v = jnp.split(qkv, 3, axis=-1)
        outs = []
        for hd in range(H):
            sl = slice(hd * dh, (hd + 1) * dh)
            sco = (q[:, sl] @ k[:, sl].T) / jnp.sqrt(jnp.float32(dh))
            p = jax.nn.softmax(sco, axis=-1)
            outs.append(p @ v[:, sl])
        attn = jnp.concatenate(outs, -1) @ tp["out_proj_weight"].T + tp["out_proj_bias"]
        xb = attn + x_res
        x_res = xb
        h = ln(xb, tp["ln2_weight"], tp["ln2_bias"])
        h = jnp.maximum(h @ tp["lin1_weight"].T + tp["lin1_bias"], 0.0)
        h = h @ tp["lin2_weight"].T + tp["lin2_bias"]
        return h + x_res

    return jax.vmap(one)(x)


if __name__ == "__main__":
    # Small shapes consistent with the module: emb_dim=32 (4 heads x 8),
    # hidden_dim=256, batch=2, seq=8 (batch_first=True).
    B, S = 2, 8
    emb_dim, num_heads, hidden_dim = 32, 4, 256

    key = jax.random.PRNGKey(0)
    kx, kp = jax.random.split(key)
    x = jax.random.normal(kx, (B, S, emb_dim), dtype=jnp.float32)

    torch_params = init_torch_style_params(kp, emb_dim, hidden_dim)
    params = prepare_params(torch_params, emb_dim, num_heads)

    out = transformer_encoder_layer(x, params, num_heads=num_heads)
    out = jax.block_until_ready(out)
    assert out.shape == (B, S, emb_dim)

    ref = reference_forward(x, torch_params, num_heads)
    err = float(jnp.max(jnp.abs(out - ref)))
    # bf16 matmul operands + approx reciprocal => slightly looser tolerance
    # than a pure-f32 run; statistics (LN / softmax) are kept in f32.
    assert err < 1e-2, f"max abs error vs reference = {err}"
    print("KERNEL_OK")
</pallas_src>

<mosaic_0001>
module attributes {stable_mosaic.version = 11 : i64} {
  func.func @encoder_layer_kernel(%arg0: memref<2x8x32xf32, #tpu.memory_space<vmem>>, %arg1: memref<1x32xf32, #tpu.memory_space<vmem>>, %arg2: memref<1x32xf32, #tpu.memory_space<vmem>>, %arg3: memref<32x96xbf16, #tpu.memory_space<vmem>>, %arg4: memref<1x96xf32, #tpu.memory_space<vmem>>, %arg5: memref<32x32xbf16, #tpu.memory_space<vmem>>, %arg6: memref<1x32xf32, #tpu.memory_space<vmem>>, %arg7: memref<1x32xf32, #tpu.memory_space<vmem>>, %arg8: memref<1x32xf32, #tpu.memory_space<vmem>>, %arg9: memref<32x256xbf16, #tpu.memory_space<vmem>>, %arg10: memref<1x256xf32, #tpu.memory_space<vmem>>, %arg11: memref<256x32xbf16, #tpu.memory_space<vmem>>, %arg12: memref<1x32xf32, #tpu.memory_space<vmem>>, %arg13: memref<2x8x32xf32, #tpu.memory_space<vmem>>) attributes {dimension_semantics = [], scalar_prefetch = 0 : i64, scratch_operands = 0 : i64, tpu.core_type = #tpu.core_type<tc>} {
    %c0 = arith.constant 0 : index
    %c0_0 = arith.constant 0 : index
    %c0_1 = arith.constant 0 : index
    %0 = vector.load %arg0[%c0, %c0_0, %c0_1] : memref<2x8x32xf32, #tpu.memory_space<vmem>>, vector<2x8x32xf32>
    %1 = vector.shape_cast %0 : vector<2x8x32xf32> to vector<16x32xf32>
    %c0_2 = arith.constant 0 : index
    %c0_3 = arith.constant 0 : index
    %2 = vector.load %arg1[%c0_2, %c0_3] : memref<1x32xf32, #tpu.memory_space<vmem>>, vector<1x32xf32>
    %c0_4 = arith.constant 0 : index
    %c0_5 = arith.constant 0 : index
    %3 = vector.load %arg2[%c0_4, %c0_5] : memref<1x32xf32, #tpu.memory_space<vmem>>, vector<1x32xf32>
    %cst = arith.constant dense<0.000000e+00> : vector<16xf32>
    %4 = vector.multi_reduction <add>, %1, %cst [1] : vector<16x32xf32> to vector<16xf32>
    %5 = vector.shape_cast %4 : vector<16xf32> to vector<16x1xf32>
    %cst_6 = arith.constant 3.200000e+01 : f32
    %6 = vector.broadcast %cst_6 : f32 to vector<16x1xf32>
    %7 = arith.divf %5, %6 : vector<16x1xf32>
    %8 = vector.broadcast %7 : vector<16x1xf32> to vector<16x32xf32>
    %9 = arith.subf %1, %8 : vector<16x32xf32>
    %10 = arith.mulf %9, %9 : vector<16x32xf32>
    %cst_7 = arith.constant dense<0.000000e+00> : vector<16xf32>
    %11 = vector.multi_reduction <add>, %10, %cst_7 [1] : vector<16x32xf32> to vector<16xf32>
    %12 = vector.shape_cast %11 : vector<16xf32> to vector<16x1xf32>
    %cst_8 = arith.constant 3.200000e+01 : f32
    %13 = vector.broadcast %cst_8 : f32 to vector<16x1xf32>
    %14 = arith.divf %12, %13 : vector<16x1xf32>
    %15 = vector.broadcast %7 : vector<16x1xf32> to vector<16x32xf32>
    %16 = arith.subf %1, %15 : vector<16x32xf32>
    %cst_9 = arith.constant 9.99999974E-6 : f32
    %17 = vector.broadcast %cst_9 : f32 to vector<16x1xf32>
    %18 = arith.addf %14, %17 : vector<16x1xf32>
    %19 = math.rsqrt %18 : vector<16x1xf32>
    %20 = vector.broadcast %19 : vector<16x1xf32> to vector<16x32xf32>
    %21 = arith.mulf %16, %20 : vector<16x32xf32>
    %22 = vector.broadcast %2 : vector<1x32xf32> to vector<16x32xf32>
    %23 = arith.mulf %21, %22 : vector<16x32xf32>
    %24 = vector.broadcast %3 : vector<1x32xf32> to vector<16x32xf32>
    %25 = arith.addf %23, %24 : vector<16x32xf32>
    %26 = arith.truncf %25 : vector<16x32xf32> to vector<16x32xbf16>
    %c0_10 = arith.constant 0 : index
    %c0_11 = arith.constant 0 : index
    %27 = vector.load %arg3[%c0_10, %c0_11] : memref<32x96xbf16, #tpu.memory_space<vmem>>, vector<32x96xbf16>
    %cst_12 = arith.constant dense<0.000000e+00> : vector<16x96xf32>
    %28 = tpu.matmul %26, %27, %cst_12 {dimension_numbers = #tpu.dot_dimension_numbers<[1], [0], [0], [1], [0, 0, 1, 1], [], []>} : vector<16x32xbf16>, vector<32x96xbf16>, vector<16x96xf32> -> vector<16x96xf32>
    %c0_13 = arith.constant 0 : index
    %c0_14 = arith.constant 0 : index
    %29 = vector.load %arg4[%c0_13, %c0_14] : memref<1x96xf32, #tpu.memory_space<vmem>>, vector<1x96xf32>
    %30 = vector.broadcast %29 : vector<1x96xf32> to vector<16x96xf32>
    %31 = arith.addf %28, %30 : vector<16x96xf32>
    %32 = vector.shape_cast %31 : vector<16x96xf32> to vector<2x8x96xf32>
    %33 = vector.extract_strided_slice %32 {offsets = [0, 0, 0], sizes = [2, 8, 8], strides = [1, 1, 1]} : vector<2x8x96xf32> to vector<2x8x8xf32>
    %34 = vector.extract_strided_slice %32 {offsets = [0, 0, 8], sizes = [2, 8, 8], strides = [1, 1, 1]} : vector<2x8x96xf32> to vector<2x8x8xf32>
    %35 = vector.extract_strided_slice %32 {offsets = [0, 0, 16], sizes = [2, 8, 8], strides = [1, 1, 1]} : vector<2x8x96xf32> to vector<2x8x8xf32>
    %36 = vector.extract_strided_slice %32 {offsets = [0, 0, 24], sizes = [2, 8, 8], strides = [1, 1, 1]} : vector<2x8x96xf32> to vector<2x8x8xf32>
    %37 = tpu.concatenate %33, %34, %35, %36 in 0 : vector<2x8x8xf32>, vector<2x8x8xf32>, vector<2x8x8xf32>, vector<2x8x8xf32> -> vector<8x8x8xf32>
    %38 = arith.truncf %37 : vector<8x8x8xf32> to vector<8x8x8xbf16>
    %39 = vector.extract_strided_slice %32 {offsets = [0, 0, 32], sizes = [2, 8, 8], strides = [1, 1, 1]} : vector<2x8x96xf32> to vector<2x8x8xf32>
    %40 = vector.extract_strided_slice %32 {offsets = [0, 0, 40], sizes = [2, 8, 8], strides = [1, 1, 1]} : vector<2x8x96xf32> to vector<2x8x8xf32>
    %41 = vector.extract_strided_slice %32 {offsets = [0, 0, 48], sizes = [2, 8, 8], strides = [1, 1, 1]} : vector<2x8x96xf32> to vector<2x8x8xf32>
    %42 = vector.extract_strided_slice %32 {offsets = [0, 0, 56], sizes = [2, 8, 8], strides = [1, 1, 1]} : vector<2x8x96xf32> to vector<2x8x8xf32>
    %43 = tpu.concatenate %39, %40, %41, %42 in 0 : vector<2x8x8xf32>, vector<2x8x8xf32>, vector<2x8x8xf32>, vector<2x8x8xf32> -> vector<8x8x8xf32>
    %44 = arith.truncf %43 : vector<8x8x8xf32> to vector<8x8x8xbf16>
    %45 = vector.extract_strided_slice %32 {offsets = [0, 0, 64], sizes = [2, 8, 8], strides = [1, 1, 1]} : vector<2x8x96xf32> to vector<2x8x8xf32>
    %46 = vector.extract_strided_slice %32 {offsets = [0, 0, 72], sizes = [2, 8, 8], strides = [1, 1, 1]} : vector<2x8x96xf32> to vector<2x8x8xf32>
    %47 = vector.extract_strided_slice %32 {offsets = [0, 0, 80], sizes = [2, 8, 8], strides = [1, 1, 1]} : vector<2x8x96xf32> to vector<2x8x8xf32>
    %48 = vector.extract_strided_slice %32 {offsets = [0, 0, 88], sizes = [2, 8, 8], strides = [1, 1, 1]} : vector<2x8x96xf32> to vector<2x8x8xf32>
    %49 = tpu.concatenate %45, %46, %47, %48 in 0 : vector<2x8x8xf32>, vector<2x8x8xf32>, vector<2x8x8xf32>, vector<2x8x8xf32> -> vector<8x8x8xf32>
    %50 = arith.truncf %49 : vector<8x8x8xf32> to vector<8x8x8xbf16>
    "tpu.trace_start"() <{level = 10 : i32, message = "nqd,nkd->nqk"}> : () -> ()
    %cst_15 = arith.constant dense<0.000000e+00> : vector<8x8x8xf32>
    %51 = tpu.matmul %38, %44, %cst_15 {dimension_numbers = #tpu.dot_dimension_numbers<[2], [2], [1], [1], [0, 0, 0, 1, 1, 1], [0], [0]>} : vector<8x8x8xbf16>, vector<8x8x8xbf16>, vector<8x8x8xf32> -> vector<8x8x8xf32>
    "tpu.trace_stop"() : () -> ()
    %cst_16 = arith.constant 0.353553385 : f32
    %52 = vector.broadcast %cst_16 : f32 to vector<8x8x8xf32>
    %53 = arith.mulf %51, %52 : vector<8x8x8xf32>
    %cst_17 = arith.constant dense<0xFF800000> : vector<8x8xf32>
    %54 = vector.multi_reduction <maximumf>, %53, %cst_17 [2] : vector<8x8x8xf32> to vector<8x8xf32>
    %55 = vector.shape_cast %54 : vector<8x8xf32> to vector<8x8x1xf32>
    %56 = vector.broadcast %55 : vector<8x8x1xf32> to vector<8x8x8xf32>
    %57 = arith.subf %53, %56 : vector<8x8x8xf32>
    %58 = math.exp %57 : vector<8x8x8xf32>
    %cst_18 = arith.constant dense<0.000000e+00> : vector<8x8xf32>
    %59 = vector.multi_reduction <add>, %58, %cst_18 [2] : vector<8x8x8xf32> to vector<8x8xf32>
    %60 = vector.shape_cast %59 : vector<8x8xf32> to vector<8x8x1xf32>
    %61 = tpu.reciprocal %60 {approx = true} : vector<8x8x1xf32> -> vector<8x8x1xf32>
    %62 = vector.broadcast %61 : vector<8x8x1xf32> to vector<8x8x8xf32>
    %63 = arith.mulf %58, %62 : vector<8x8x8xf32>
    %64 = arith.truncf %63 : vector<8x8x8xf32> to vector<8x8x8xbf16>
    "tpu.trace_start"() <{level = 10 : i32, message = "nqk,nkd->nqd"}> : () -> ()
    %cst_19 = arith.constant dense<0.000000e+00> : vector<8x8x8xf32>
    %65 = tpu.matmul %64, %50, %cst_19 {dimension_numbers = #tpu.dot_dimension_numbers<[2], [1], [1], [2], [0, 0, 0, 1, 1, 2], [0], [0]>} : vector<8x8x8xbf16>, vector<8x8x8xbf16>, vector<8x8x8xf32> -> vector<8x8x8xf32>
    "tpu.trace_stop"() : () -> ()
    %66 = vector.extract_strided_slice %65 {offsets = [0, 0, 0], sizes = [2, 8, 8], strides = [1, 1, 1]} : vector<8x8x8xf32> to vector<2x8x8xf32>
    %67 = vector.extract_strided_slice %65 {offsets = [2, 0, 0], sizes = [2, 8, 8], strides = [1, 1, 1]} : vector<8x8x8xf32> to vector<2x8x8xf32>
    %68 = vector.extract_strided_slice %65 {offsets = [4, 0, 0], sizes = [2, 8, 8], strides = [1, 1, 1]} : vector<8x8x8xf32> to vector<2x8x8xf32>
    %69 = vector.extract_strided_slice %65 {offsets = [6, 0, 0], sizes = [2, 8, 8], strides = [1, 1, 1]} : vector<8x8x8xf32> to vector<2x8x8xf32>
    %70 = tpu.concatenate %66, %67, %68, %69 in 2 : vector<2x8x8xf32>, vector<2x8x8xf32>, vector<2x8x8xf32>, vector<2x8x8xf32> -> vector<2x8x32xf32>
    %71 = vector.shape_cast %70 : vector<2x8x32xf32> to vector<16x32xf32>
    %72 = arith.truncf %71 : vector<16x32xf32> to vector<16x32xbf16>
    %c0_20 = arith.constant 0 : index
    %c0_21 = arith.constant 0 : index
    %73 = vector.load %arg5[%c0_20, %c0_21] : memref<32x32xbf16, #tpu.memory_space<vmem>>, vector<32x32xbf16>
    %cst_22 = arith.constant dense<0.000000e+00> : vector<16x32xf32>
    %74 = tpu.matmul %72, %73, %cst_22 {dimension_numbers = #tpu.dot_dimension_numbers<[1], [0], [0], [1], [0, 0, 1, 1], [], []>} : vector<16x32xbf16>, vector<32x32xbf16>, vector<16x32xf32> -> vector<16x32xf32>
    %c0_23 = arith.constant 0 : index
    %c0_24 = arith.constant 0 : index
    %75 = vector.load %arg6[%c0_23, %c0_24] : memref<1x32xf32, #tpu.memory_space<vmem>>, vector<1x32xf32>
    %76 = vector.broadcast %75 : vector<1x32xf32> to vector<16x32xf32>
    %77 = arith.addf %74, %76 : vector<16x32xf32>
    %78 = arith.addf %77, %1 : vector<16x32xf32>
    %c0_25 = arith.constant 0 : index
    %c0_26 = arith.constant 0 : index
    %79 = vector.load %arg7[%c0_25, %c0_26] : memref<1x32xf32, #tpu.memory_space<vmem>>, vector<1x32xf32>
    %c0_27 = arith.constant 0 : index
    %c0_28 = arith.constant 0 : index
    %80 = vector.load %arg8[%c0_27, %c0_28] : memref<1x32xf32, #tpu.memory_space<vmem>>, vector<1x32xf32>
    %cst_29 = arith.constant dense<0.000000e+00> : vector<16xf32>
    %81 = vector.multi_reduction <add>, %78, %cst_29 [1] : vector<16x32xf32> to vector<16xf32>
    %82 = vector.shape_cast %81 : vector<16xf32> to vector<16x1xf32>
    %cst_30 = arith.constant 3.200000e+01 : f32
    %83 = vector.broadcast %cst_30 : f32 to vector<16x1xf32>
    %84 = arith.divf %82, %83 : vector<16x1xf32>
    %85 = vector.broadcast %84 : vector<16x1xf32> to vector<16x32xf32>
    %86 = arith.subf %78, %85 : vector<16x32xf32>
    %87 = arith.mulf %86, %86 : vector<16x32xf32>
    %cst_31 = arith.constant dense<0.000000e+00> : vector<16xf32>
    %88 = vector.multi_reduction <add>, %87, %cst_31 [1] : vector<16x32xf32> to vector<16xf32>
    %89 = vector.shape_cast %88 : vector<16xf32> to vector<16x1xf32>
    %cst_32 = arith.constant 3.200000e+01 : f32
    %90 = vector.broadcast %cst_32 : f32 to vector<16x1xf32>
    %91 = arith.divf %89, %90 : vector<16x1xf32>
    %92 = vector.broadcast %84 : vector<16x1xf32> to vector<16x32xf32>
    %93 = arith.subf %78, %92 : vector<16x32xf32>
    %cst_33 = arith.constant 9.99999974E-6 : f32
    %94 = vector.broadcast %cst_33 : f32 to vector<16x1xf32>
    %95 = arith.addf %91, %94 : vector<16x1xf32>
    %96 = math.rsqrt %95 : vector<16x1xf32>
    %97 = vector.broadcast %96 : vector<16x1xf32> to vector<16x32xf32>
    %98 = arith.mulf %93, %97 : vector<16x32xf32>
    %99 = vector.broadcast %79 : vector<1x32xf32> to vector<16x32xf32>
    %100 = arith.mulf %98, %99 : vector<16x32xf32>
    %101 = vector.broadcast %80 : vector<1x32xf32> to vector<16x32xf32>
    %102 = arith.addf %100, %101 : vector<16x32xf32>
    %103 = arith.truncf %102 : vector<16x32xf32> to vector<16x32xbf16>
    %c0_34 = arith.constant 0 : index
    %c0_35 = arith.constant 0 : index
    %104 = vector.load %arg9[%c0_34, %c0_35] : memref<32x256xbf16, #tpu.memory_space<vmem>>, vector<32x256xbf16>
    %cst_36 = arith.constant dense<0.000000e+00> : vector<16x256xf32>
    %105 = tpu.matmul %103, %104, %cst_36 {dimension_numbers = #tpu.dot_dimension_numbers<[1], [0], [0], [1], [0, 0, 1, 1], [], []>} : vector<16x32xbf16>, vector<32x256xbf16>, vector<16x256xf32> -> vector<16x256xf32>
    %c0_37 = arith.constant 0 : index
    %c0_38 = arith.constant 0 : index
    %106 = vector.load %arg10[%c0_37, %c0_38] : memref<1x256xf32, #tpu.memory_space<vmem>>, vector<1x256xf32>
    %107 = vector.broadcast %106 : vector<1x256xf32> to vector<16x256xf32>
    %108 = arith.addf %105, %107 : vector<16x256xf32>
    %cst_39 = arith.constant 0.000000e+00 : f32
    %109 = vector.broadcast %cst_39 : f32 to vector<16x256xf32>
    %110 = arith.maximumf %108, %109 : vector<16x256xf32>
    %111 = arith.truncf %110 : vector<16x256xf32> to vector<16x256xbf16>
    %c0_40 = arith.constant 0 : index
    %c0_41 = arith.constant 0 : index
    %112 = vector.load %arg11[%c0_40, %c0_41] : memref<256x32xbf16, #tpu.memory_space<vmem>>, vector<256x32xbf16>
    %cst_42 = arith.constant dense<0.000000e+00> : vector<16x32xf32>
    %113 = tpu.matmul %111, %112, %cst_42 {dimension_numbers = #tpu.dot_dimension_numbers<[1], [0], [0], [1], [0, 0, 1, 1], [], []>} : vector<16x256xbf16>, vector<256x32xbf16>, vector<16x32xf32> -> vector<16x32xf32>
    %c0_43 = arith.constant 0 : index
    %c0_44 = arith.constant 0 : index
    %114 = vector.load %arg12[%c0_43, %c0_44] : memref<1x32xf32, #tpu.memory_space<vmem>>, vector<1x32xf32>
    %115 = vector.broadcast %114 : vector<1x32xf32> to vector<16x32xf32>
    %116 = arith.addf %113, %115 : vector<16x32xf32>
    %117 = arith.addf %116, %78 : vector<16x32xf32>
    %118 = vector.shape_cast %117 : vector<16x32xf32> to vector<2x8x32xf32>
    %c0_45 = arith.constant 0 : index
    %c0_46 = arith.constant 0 : index
    %c0_47 = arith.constant 0 : index
    %119 = vector.load %arg13[%c0_45, %c0_46, %c0_47] : memref<2x8x32xf32, #tpu.memory_space<vmem>>, vector<2x8x32xf32>
    tpu.vector_store %arg13[%c0_45, %c0_46, %c0_47], %118 {strides = array<i32>} : memref<2x8x32xf32, #tpu.memory_space<vmem>>, vector<2x8x32xf32>,
    return
  }
}

</mosaic_0001>

<bundles_post_ra>
// kernel: tpu_custom_call.1
= control target key start
LH: loop header
LB: loop body
LE: loop exit
PB: predicated region body
PF: predicated region fallthrough
CT: control target
= control target key end

     0   :  { %vm50_vm0 = vcmask 261120   ;;  %s2279_s0 = inlined_call_operand.vmem [shape: f32[2,8,32], index: 0, kind: input, shape index: {}]   ;;  %s2280_s1 = inlined_call_operand.vmem [shape: f32[1,32], index: 1, kind: input, shape index: {}]   ;;  %s2281_s2 = inlined_call_operand.vmem [shape: f32[1,32], index: 2, kind: input, shape index: {}]   ;;  %s2282_s3 = inlined_call_operand.vmem [shape: bf16[32,96], index: 3, kind: input, shape index: {}]   ;;  %s2283_s4 = inlined_call_operand.vmem [shape: f32[1,96], index: 4, kind: input, shape index: {}]   ;;  %s2284_s5 = inlined_call_operand.vmem [shape: bf16[32,32], index: 5, kind: input, shape index: {}]   ;;  %s2285_s6 = inlined_call_operand.vmem [shape: f32[1,32], index: 6, kind: input, shape index: {}]   ;;  %s2286_s7 = inlined_call_operand.vmem [shape: f32[1,32], index: 7, kind: input, shape index: {}]   ;;  %s2287_s8 = inlined_call_operand.vmem [shape: f32[1,32], index: 8, kind: input, shape index: {}]   ;;  %s2288_s9 = inlined_call_operand.vmem [shape: bf16[32,256], index: 9, kind: input, shape index: {}]   ;;  %s2289_s10 = inlined_call_operand.vmem [shape: f32[1,256], index: 10, kind: input, shape index: {}]   ;;  %s2290_s11 = inlined_call_operand.vmem [shape: bf16[256,32], index: 11, kind: input, shape index: {}]   ;;  %s2291_s12 = inlined_call_operand.vmem [shape: f32[1,32], index: 12, kind: input, shape index: {}]   ;;  %s2292_s13 = inlined_call_operand.hbm [shape: f32[2,8,32], index: 13, kind: output, shape index: {}]  }
   0x1   :  { %v1944_v0 = vld [vmem:[%s2279_s0] sm:$0xff]  ;;  %v1949_v1 = vld [vmem:[%s2279_s0 + $0x8] sm:$0xff] }
   0x2   :  { %v51_v2 = vsel %vm50_vm0, %v1944_v0, 0.0  ;;  %v54_v3 = vsel %vm50_vm0, %v1949_v1, 0.0 }
   0x3   :  { %52 = vadd.xlane.f32.xlu0 %v51_v2 }
   0x7   :  { %55 = vadd.xlane.f32.xlu0 %v54_v3 }
   0x8   :  { %18 = vsyncpa [#allocation3], 0  ;;  %v1768_v14 = vld [vmem:[%s2282_s3] sm:$0xff]   ;;  %v1858_v15 = vmov 0.0   ;;  %v1769_v16 = vld [vmem:[%s2282_s3 + $0x8] sm:$0xff]   ;;  %vm1859_vm1 = vmmov 0  }
   0x9   :  { %1613 = vmatprep.subr.bf16.mxu0 %v1858_v15  ;;  %1633 = vmatprep.subr.bf16.mxu1 %v1858_v15  ;;  %v1503_v25 = vld [vmem:[%s2280_s1] ss:$0 sm:$0xff]  ;;  %s1860_s1 = smov 112   ;;  %s1862_s20 = smov 104   ;;  %vm193_vm2 = vcmask 64512   ;;  %vm692_vm3 = vcmask 1043456  }
   0xa   :  { %1614 = vmatpush3.bf16.msra.mxu0 %v1768_v14  ;;  %1617 = vmatprep.mubr.msk.bf16.mxu0 %vm1859_vm1, %v1858_v15  ;;  %v1504_v29 = vld [vmem:[%s2281_s2] ss:$0 sm:$0xff]  ;;  %s1861_s2 = smov 120   ;;  %s1863_s21 = smov 96   ;;  %vm1098_vm4 = vcmask 130048   ;;  %vm1101_vm5 = vcmask 195584  }
   0xb   :  { %1615 = vmatprep.subr.bf16.mxu0 %v1858_v15  ;;  %1635 = vmatprep.mubr.msk.bf16.mxu1 %vm1859_vm1, %v1858_v15  ;;  %v1505_v34 = vld [vmem:[%s2283_s4] ss:$0 sm:$0xff]  ;;  %s1864_s4 = smov 64   ;;  %s1865_s22 = smov 8  }
   0xc   :  { %s1866_s27 = smov 16   ;;  %s1867_s28 = smov 24  }
   0xe   :  { %1616 = vmatpush3.bf16.msra.mxu0 %v1769_v16 }
   0xf   :  { %1621 = vmatprep.subr.bf16.mxu0 %v1858_v15 }
  0x90   :  { %v53_v4 = vpop.xlane.xlu0 %52 }
  0x91   :  { %v58_v5 = vmul.f32 0.03125, %v53_v4 }
  0x93   :  { %v60_v6 = vsub.f32 %v1944_v0, %v58_v5 }
  0x94   :  { %v56_v7 = vpop.xlane.xlu0 %55 }
  0x95   :  { %v59_v8 = vmul.f32 0.03125, %v56_v7  ;;  %v62_v9 = vmul.f32 %v60_v6, %v60_v6 }
  0x97   :  { %v61_v10 = vsub.f32 %v1949_v1, %v59_v8  ;;  %v64_v11 = vsel %vm50_vm0, %v62_v9, 0.0 }
  0x98   :  { %65 = vadd.xlane.f32.xlu1 %v64_v11 }
  0x99   :  { %v63_v12 = vmul.f32 %v61_v10, %v61_v10 }
  0x9b   :  { %v67_v13 = vsel %vm50_vm0, %v63_v12, 0.0 }
  0x9c   :  { %68 = vadd.xlane.f32.xlu1 %v67_v13 }
 0x125   :  { %v66_v17 = vpop.xlane.xlu1 %65 }
 0x126   :  { %v70_v18 = vmul.f32 0.03125, %v66_v17 }
 0x128   :  { %v72_v19 = vadd.f32 1e-05, %v70_v18 }
 0x129   :  { %v69_v20 = vpop.xlane.xlu1 %68 }
 0x12a   :  { %1794 = vrsqrt.f32 %v72_v19  ;;  %v71_v21 = vmul.f32 0.03125, %v69_v20 }
 0x12c   :  { %v73_v22 = vadd.f32 1e-05, %v71_v21 }
 0x12e   :  { %1796 = vrsqrt.f32 %v73_v22 }
 0x134   :  { %v1795_v23 = vpop.eup %1794 }
 0x135   :  { %v76_v24 = vmul.f32 %v1795_v23, %v60_v6 }
 0x137   :  { %v84_v28 = vmul.f32 %v1503_v25, %v76_v24 }
 0x138   :  { %v1797_v26 = vpop.eup %1796 }
 0x139   :  { %v77_v27 = vmul.f32 %v1797_v26, %v61_v10  ;;  %v92_v31 = vadd.f32 %v1504_v29, %v84_v28 }
 0x13b   :  { %v85_v30 = vmul.f32 %v1503_v25, %v77_v27 }
 0x13d   :  { %v93_v32 = vadd.f32 %v1504_v29, %v85_v30 }
 0x13f   :  { %v94_v33 = vpack.c.bf16 %v93_v32, %v92_v31 }
 0x141   :  { %1618 = vmatmul.mubr.msk.bf16.vlgmr.msra.gmra.mrb[0].mxu0 %vm50_vm0, %v94_v33 }
 0x142   :  { %1623 = vmatprep.mubr.msk.bf16.mxu0 %vm1859_vm1, %v1858_v15 }
 0x214   :  { %v155_v35 = vpop.f32.mrb[0].mxu0 }
 0x215   :  { %v1619_v36 = vpop.f32.mrb[1].mxu0  ;;  %v156_v38 = vadd.f32 %v1505_v34, %v155_v35 }
 0x216   :  { %v158_v37 = vpop.f32.mrb[2].mxu0 }
 0x217   :  { %v159_v39 = vadd.f32 %v1505_v34, %v158_v37  ;;  %v1620_v40 = vpop.f32.mrb[3].mxu0  ;;  %v182_v43 = vpack.c.bf16 %v156_v38, %v156_v38 }
 0x219   :  { %v1743_v41 = vpack.i.bf16 %v159_v39, %v156_v38  ;;  %v1985_v42 = vpack.c.bf16 %v159_v39, %v159_v39 }
 0x21b   :  { %1744 = vrot.lane.b32.xlu1 %v1743_v41, %s1860_s1  ;;  %1739 = vrot.lane.b32.xlu0 %v1743_v41, %s1861_s2 }
 0x21f   :  { %1749 = vrot.lane.b32.xlu1 %v1743_v41, %s1862_s20  ;;  %241 = vrot.lane.b32.xlu0 %v1985_v42, %s1863_s21 }
 0x223   :  { %191 = vrot.lane.b32.xlu1 %v182_v43, %s1863_s21 }
 0x28d   :  { %v1745_v44 = vpop.permute.xlu1 %1744  ;;  %v1740_v45 = vpop.permute.xlu0 %1739 }
 0x28e   :  { %v1742_v46 = vunpack.i.h.bf16 %v1740_v45  ;;  %v1741_v47 = vunpack.i.l.bf16 %v1740_v45  ;;  %v1747_v48 = vunpack.i.h.bf16 %v1745_v44  ;;  %v1746_v49 = vunpack.i.l.bf16 %v1745_v44 }
 0x290   :  { %v1988_v50 = vpack.c.bf16 %v1742_v46, %v1742_v46  ;;  %v1990_v51 = vpack.c.bf16 %v1741_v47, %v1741_v47  ;;  %v1994_v53 = vpack.c.bf16 %v1747_v48, %v1747_v48  ;;  %v1996_v54 = vpack.c.bf16 %v1746_v49, %v1746_v49 }
 0x291   :  { %v1750_v52 = vpop.permute.xlu1 %1749  ;;  %v242_v61 = vpop.permute.xlu0 %241 }
 0x292   :  { %290 = vrot.lane.b32.xlu1 %v1990_v51, %s1863_s21  ;;  %339 = vrot.lane.b32.xlu0 %v1988_v50, %s1863_s21  ;;  %v1752_v55 = vunpack.i.h.bf16 %v1750_v52  ;;  %v1751_v56 = vunpack.i.l.bf16 %v1750_v52  ;;  %v247_v62 = vsel %vm193_vm2, %v242_v61, 0 }
 0x294   :  { %v2001_v59 = vpack.c.bf16 %v1752_v55, %v1752_v55  ;;  %v2003_v60 = vpack.c.bf16 %v1751_v56, %v1751_v56 }
 0x295   :  { %v192_v57 = vpop.permute.xlu1 %191 }
 0x296   :  { %v198_v58 = vsel %vm193_vm2, %v192_v57, 0  ;;  %388 = vrot.lane.b32.xlu1 %v1996_v54, %s1863_s21  ;;  %437 = vrot.lane.b32.xlu0 %v1994_v53, %s1863_s21 }
 0x297   :  { %1622 = vmatpush3.bf16.xpose.msra.mxu0 %v198_v58 }
 0x298   :  { %1627 = vmatprep.subr.bf16.mxu0 %v1858_v15 }
 0x29a   :  { %486 = vrot.lane.b32.xlu1 %v2003_v60, %s1863_s21  ;;  %535 = vrot.lane.b32.xlu0 %v2001_v59, %s1863_s21 }
 0x29e   :  { %1624 = vmatmul.mubr.msk.bf16.vlgmr.msra.gmra.mrb[4].mxu0 %vm193_vm2, %v182_v43  ;;  %687 = vrot.lane.b32.xlu1 %v182_v43, %s1864_s4 }
 0x29f   :  { %1628 = vmatpush3.bf16.xpose.msra.mxu0 %v247_v62  ;;  %1629 = vmatprep.mubr.msk.bf16.mxu0 %vm1859_vm1, %v1858_v15 }
 0x2a0   :  { %1639 = vmatprep.subr.bf16.mxu0 %v1858_v15 }
 0x2a6   :  { %1630 = vmatmul.mubr.msk.bf16.vlgmr.msra.gmra.mrb[8].mxu0 %vm193_vm2, %v1985_v42 }
 0x2a7   :  { %1641 = vmatprep.mubr.msk.bf16.mxu0 %vm1859_vm1, %v1858_v15 }
 0x304   :  { %v291_v63 = vpop.permute.xlu1 %290  ;;  %v340_v2 = vpop.permute.xlu0 %339 }
 0x305   :  { %v345_v3 = vsel %vm193_vm2, %v340_v2, 0  ;;  %v296_v4 = vsel %vm193_vm2, %v291_v63, 0 }
 0x306   :  { %1634 = vmatpush3.bf16.xpose.msra.mxu1 %v296_v4  ;;  %1640 = vmatpush3.bf16.xpose.msra.mxu0 %v345_v3 }
 0x307   :  { %1645 = vmatprep.subr.bf16.mxu1 %v1858_v15  ;;  %1651 = vmatprep.subr.bf16.mxu0 %v1858_v15 }
 0x308   :  { %v389_v5 = vpop.permute.xlu1 %388  ;;  %v438_v6 = vpop.permute.xlu0 %437 }
 0x309   :  { %v394_v7 = vsel %vm193_vm2, %v389_v5, 0  ;;  %v443_v8 = vsel %vm193_vm2, %v438_v6, 0 }
 0x30c   :  { %v487_v9 = vpop.permute.xlu1 %486  ;;  %v536_v10 = vpop.permute.xlu0 %535 }
 0x30d   :  { %1636 = vmatmul.mubr.msk.bf16.vlgmr.msra.gmra.mrb[0].mxu1 %vm193_vm2, %v1990_v51  ;;  %1642 = vmatmul.mubr.msk.bf16.vlgmr.msra.gmra.mrb[12].mxu0 %vm193_vm2, %v1988_v50  ;;  %v492_v11 = vsel %vm193_vm2, %v487_v9, 0  ;;  %v541_v12 = vsel %vm193_vm2, %v536_v10, 0 }
 0x30e   :  { %1646 = vmatpush3.bf16.xpose.msra.mxu1 %v394_v7  ;;  %1652 = vmatpush3.bf16.xpose.msra.mxu0 %v443_v8 }
 0x30f   :  { %1647 = vmatprep.mubr.msk.bf16.mxu1 %vm1859_vm1, %v1858_v15  ;;  %1653 = vmatprep.mubr.msk.bf16.mxu0 %vm1859_vm1, %v1858_v15 }
 0x310   :  { %1657 = vmatprep.subr.bf16.mxu1 %v1858_v15  ;;  %1663 = vmatprep.subr.bf16.mxu0 %v1858_v15  ;;  %v688_v13 = vpop.permute.xlu1 %687 }
 0x311   :  { %v694_v14 = vsel %vm692_vm3, %v688_v13, 0 }
 0x315   :  { %1648 = vmatmul.mubr.msk.bf16.vlgmr.msra.gmra.mrb[4].mxu1 %vm193_vm2, %v1996_v54  ;;  %1654 = vmatmul.mubr.msk.bf16.vlgmr.msra.gmra.mrb[16].mxu0 %vm193_vm2, %v1994_v53 }
 0x316   :  { %1658 = vmatpush3.bf16.xpose.msra.mxu1 %v492_v11  ;;  %1664 = vmatpush3.bf16.xpose.msra.mxu0 %v541_v12 }
 0x317   :  { %1659 = vmatprep.mubr.msk.bf16.mxu1 %vm1859_vm1, %v1858_v15  ;;  %1665 = vmatprep.mubr.msk.bf16.mxu0 %vm1859_vm1, %v1858_v15 }
 0x318   :  { %1669 = vmatprep.subr.bf16.mxu1 %v1858_v15  ;;  %1675 = vmatprep.subr.bf16.mxu0 %v1858_v15 }
 0x31d   :  { %1660 = vmatmul.mubr.msk.bf16.vlgmr.msra.gmra.mrb[8].mxu1 %vm193_vm2, %v2003_v60  ;;  %1666 = vmatmul.mubr.msk.bf16.vlgmr.msra.gmra.mrb[20].mxu0 %vm193_vm2, %v2001_v59 }
 0x31e   :  { %1670 = vmatpush3.bf16.msra.mxu1 %v694_v14  ;;  %1677 = vmatprep.mubr.msk.bf16.mxu0 %vm1859_vm1, %v1858_v15 }
 0x31f   :  { %1671 = vmatprep.mubr.msk.bf16.mxu1 %vm1859_vm1, %v1858_v15  ;;  %1681 = vmatprep.subr.bf16.mxu1 %v1858_v15 }
 0x371   :  { %v234_v16 = vpop.f32.mrb[4].mxu0 }
 0x372   :  { %v2056_v17 = vmul.f32 0.35355338, %v234_v16  ;;  %v1625_v18 = vpop.f32.mrb[5].mxu0 }
 0x373   :  { %v237_v19 = vpop.f32.mrb[6].mxu0 }
 0x374   :  { %v1626_v20 = vpop.f32.mrb[7].mxu0  ;;  %v591_v21 = vsel %vm193_vm2, %v2056_v17, -inf }
 0x375   :  { %592 = vmax.xlane.f32.xlu1 %v591_v21 }
 0x379   :  { %v283_v22 = vpop.f32.mrb[8].mxu0 }
 0x37a   :  { %v584_v23 = vmul.f32 0.35355338, %v283_v22  ;;  %v1631_v24 = vpop.f32.mrb[9].mxu0 }
 0x37b   :  { %v286_v25 = vpop.f32.mrb[10].mxu0 }
 0x37c   :  { %v1632_v26 = vpop.f32.mrb[11].mxu0  ;;  %v594_v27 = vsel %vm193_vm2, %v584_v23, -inf }
 0x37d   :  { %595 = vmax.xlane.f32.xlu0 %v594_v27 }
 0x3e0   :  { %v332_v28 = vpop.f32.mrb[0].mxu1  ;;  %v381_v29 = vpop.f32.mrb[12].mxu0 }
 0x3e1   :  { %v585_v30 = vmul.f32 0.35355338, %v332_v28  ;;  %v1637_v31 = vpop.f32.mrb[1].mxu1  ;;  %v1643_v32 = vpop.f32.mrb[13].mxu0  ;;  %v586_v35 = vmul.f32 0.35355338, %v381_v29 }
 0x3e2   :  { %v335_v33 = vpop.f32.mrb[2].mxu1  ;;  %v384_v34 = vpop.f32.mrb[14].mxu0 }
 0x3e3   :  { %v1638_v36 = vpop.f32.mrb[3].mxu1  ;;  %v1644_v37 = vpop.f32.mrb[15].mxu0  ;;  %v597_v38 = vsel %vm193_vm2, %v585_v30, -inf  ;;  %v600_v39 = vsel %vm193_vm2, %v586_v35, -inf }
 0x3e4   :  { %598 = vmax.xlane.f32.xlu0 %v597_v38 }
 0x3e8   :  { %v430_v40 = vpop.f32.mrb[4].mxu1  ;;  %601 = vmax.xlane.f32.xlu0 %v600_v39  ;;  %v479_v41 = vpop.f32.mrb[16].mxu0 }
 0x3e9   :  { %v587_v43 = vmul.f32 0.35355338, %v430_v40  ;;  %v2063_v44 = vmul.f32 0.35355338, %v479_v41  ;;  %v1649_v45 = vpop.f32.mrb[5].mxu1  ;;  %v1655_v46 = vpop.f32.mrb[17].mxu0 }
 0x3ea   :  { %v433_v47 = vpop.f32.mrb[6].mxu1  ;;  %v482_v48 = vpop.f32.mrb[18].mxu0 }
 0x3eb   :  { %v1650_v49 = vpop.f32.mrb[7].mxu1  ;;  %v1656_v52 = vpop.f32.mrb[19].mxu0  ;;  %v603_v55 = vsel %vm193_vm2, %v587_v43, -inf  ;;  %v606_v56 = vsel %vm193_vm2, %v2063_v44, -inf }
 0x3ec   :  { %604 = vmax.xlane.f32.xlu1 %v603_v55  ;;  %607 = vmax.xlane.f32.xlu0 %v606_v56 }
 0x3f0   :  { %v528_v57 = vpop.f32.mrb[8].mxu1  ;;  %v577_v58 = vpop.f32.mrb[20].mxu0 }
 0x3f1   :  { %v589_v61 = vmul.f32 0.35355338, %v528_v57  ;;  %v2068_v62 = vmul.f32 0.35355338, %v577_v58  ;;  %v1661_v63 = vpop.f32.mrb[9].mxu1  ;;  %v1667_v2 = vpop.f32.mrb[21].mxu0 }
 0x3f2   :  { %v531_v3 = vpop.f32.mrb[10].mxu1  ;;  %v580_v4 = vpop.f32.mrb[22].mxu0 }
 0x3f3   :  { %v1662_v5 = vpop.f32.mrb[11].mxu1  ;;  %v1668_v6 = vpop.f32.mrb[23].mxu0  ;;  %v609_v7 = vsel %vm193_vm2, %v589_v61, -inf  ;;  %v612_v8 = vsel %vm193_vm2, %v2068_v62, -inf }
 0x3f4   :  { %610 = vmax.xlane.f32.xlu1 %v609_v7  ;;  %613 = vmax.xlane.f32.xlu0 %v612_v8 }
 0x402   :  { %v593_v11 = vpop.xlane.xlu1 %592 }
 0x403   :  { %v615_v12 = vsub.f32 %v2056_v17, %v593_v11 }
 0x405   :  { %784 = vrot.lane.b32.xlu1 %v1990_v51, %s1864_s4  ;;  %v623_v14 = vmul.f32 1.442695, %v615_v12 }
 0x409   :  { %832 = vrot.lane.b32.xlu1 %v1988_v50, %s1864_s4 }
 0x40a   :  { %736 = vrot.lane.b32.xlu0 %v1985_v42, %s1864_s4  ;;  %v596_v9 = vpop.xlane.xlu0 %595 }
 0x40b   :  { %v616_v10 = vsub.f32 %v584_v23, %v596_v9 }
 0x40d   :  { %v625_v13 = vmul.f32 1.442695, %v616_v10 }
 0x40f   :  { %1798 = vpow2.f32 %v625_v13 }
 0x410   :  { %1800 = vpow2.f32 %v623_v14 }
 0x419   :  { %v1799_v16 = vpop.eup %1798 }
 0x41a   :  { %v642_v18 = vsel %vm193_vm2, %v1799_v16, 0.0  ;;  %v2081_v19 = vpop.eup %1800 }
 0x41b   :  { %v639_v50 = vsel %vm193_vm2, %v2081_v19, 0.0 }
 0x429   :  { %643 = vadd.xlane.f32.xlu0 %v642_v18 }
 0x42d   :  { %640 = vadd.xlane.f32.xlu1 %v639_v50 }
 0x43e   :  { %880 = vrot.lane.b32.xlu1 %v1996_v54, %s1864_s4 }
 0x471   :  { %v599_v42 = vpop.xlane.xlu0 %598 }
 0x472   :  { %v617_v51 = vsub.f32 %v585_v30, %v599_v42 }
 0x474   :  { %v627_v17 = vmul.f32 1.442695, %v617_v51 }
 0x475   :  { %v602_v20 = vpop.xlane.xlu0 %601 }
 0x476   :  { %1802 = vpow2.f32 %v627_v17  ;;  %v618_v21 = vsub.f32 %v586_v35, %v602_v20 }
 0x478   :  { %v629_v22 = vmul.f32 1.442695, %v618_v21 }
 0x479   :  { %v605_v23 = vpop.xlane.xlu1 %604  ;;  %v608_v26 = vpop.xlane.xlu0 %607 }
 0x47a   :  { %1804 = vpow2.f32 %v629_v22  ;;  %v619_v24 = vsub.f32 %v587_v43, %v605_v23  ;;  %v620_v40 = vsub.f32 %v2063_v44, %v608_v26 }
 0x47c   :  { %v631_v25 = vmul.f32 1.442695, %v619_v24  ;;  %v633_v41 = vmul.f32 1.442695, %v620_v40 }
 0x47e   :  { %1806 = vpow2.f32 %v631_v25 }
 0x480   :  { %v2087_v27 = vpop.eup %1802 }
 0x481   :  { %v611_v28 = vpop.xlane.xlu1 %610  ;;  %v614_v29 = vpop.xlane.xlu0 %613  ;;  %v645_v54 = vsel %vm193_vm2, %v2087_v27, 0.0 }
 0x482   :  { %v621_v31 = vsub.f32 %v589_v61, %v611_v28  ;;  %646 = vadd.xlane.f32.xlu1 %v645_v54  ;;  %v622_v43 = vsub.f32 %v2068_v62, %v614_v29 }
 0x484   :  { %v2091_v30 = vpop.eup %1804  ;;  %v635_v32 = vmul.f32 1.442695, %v621_v31  ;;  %v637_v45 = vmul.f32 1.442695, %v622_v43 }
 0x485   :  { %v737_v33 = vpop.permute.xlu0 %736  ;;  %v648_v34 = vsel %vm193_vm2, %v2091_v30, 0.0  ;;  %v785_v46 = vpop.permute.xlu1 %784 }
 0x486   :  { %1808 = vpow2.f32 %v635_v32  ;;  %v742_v35 = vsel %vm692_vm3, %v737_v33, 0  ;;  %649 = vadd.xlane.f32.xlu0 %v648_v34  ;;  %v790_v2 = vsel %vm692_vm3, %v785_v46, 0 }
 0x487   :  { %1676 = vmatpush3.bf16.msra.mxu0 %v742_v35  ;;  %1810 = vpow2.f32 %v633_v41 }
 0x488   :  { %v2096_v36 = vpop.eup %1806  ;;  %1687 = vmatprep.subr.bf16.mxu0 %v1858_v15  ;;  %1812 = vpow2.f32 %v637_v45 }
 0x489   :  { %v651_v37 = vsel %vm193_vm2, %v2096_v36, 0.0  ;;  %v833_v47 = vpop.permute.xlu1 %832 }
 0x48a   :  { %652 = vadd.xlane.f32.xlu1 %v651_v37  ;;  %v838_v61 = vsel %vm692_vm3, %v833_v47, 0 }
 0x490   :  { %v2101_v38 = vpop.eup %1808 }
 0x491   :  { %v657_v39 = vsel %vm193_vm2, %v2101_v38, 0.0  ;;  %v2111_v49 = vpop.eup %1810 }
 0x492   :  { %658 = vadd.xlane.f32.xlu1 %v657_v39  ;;  %v2115_v55 = vpop.eup %1812 }
 0x49c   :  { %928 = vrot.lane.b32.xlu0 %v1994_v53, %s1864_s4  ;;  %v654_v53 = vsel %vm193_vm2, %v2111_v49, 0.0 }
 0x4a3   :  { %976 = vrot.lane.b32.xlu1 %v2003_v60, %s1864_s4  ;;  %v660_v60 = vsel %vm193_vm2, %v2115_v55, 0.0 }
 0x4b6   :  { %v644_v48 = vpop.xlane.xlu0 %643 }
 0x4b7   :  { %1814 = vrcp.f32 %v644_v48 }
 0x4ba   :  { %v641_v52 = vpop.xlane.xlu1 %640 }
 0x4bb   :  { %1816 = vrcp.f32 %v641_v52  ;;  %655 = vadd.xlane.f32.xlu0 %v654_v53 }
 0x4be   :  { %v881_v3 = vpop.permute.xlu1 %880 }
 0x4bf   :  { %661 = vadd.xlane.f32.xlu0 %v660_v60  ;;  %v886_v11 = vsel %vm692_vm3, %v881_v3, 0 }
 0x4c1   :  { %v1815_v44 = vpop.eup %1814 }
 0x4c2   :  { %v672_v56 = vmul.f32 %v1815_v44, %v1799_v16 }
 0x4c4   :  { %v680_v57 = vpack.c.bf16 %v672_v56, %v672_v56 }
 0x4c5   :  { %v1817_v58 = vpop.eup %1816 }
 0x4c6   :  { %v671_v62 = vmul.f32 %v1817_v58, %v2081_v19  ;;  %1678 = vmatmul.mubr.msk.bf16.vlgmr.msra.gmra.mrb[24].mxu0 %vm193_vm2, %v680_v57 }
 0x4c7   :  { %1688 = vmatpush3.bf16.msra.mxu0 %v838_v61  ;;  %1689 = vmatprep.mubr.msk.bf16.mxu0 %vm1859_vm1, %v1858_v15  ;;  %v1770_v61 = vld [vmem:[%s2284_s5] sm:$0xff]  }
 0x4c8   :  { %v679_v63 = vpack.c.bf16 %v671_v62, %v671_v62  ;;  %1699 = vmatprep.subr.bf16.mxu0 %v1858_v15  ;;  %v1771_v62 = vld [vmem:[%s2284_s5 + $0x8] sm:$0xff]  }
 0x4ca   :  { %1672 = vmatmul.mubr.msk.bf16.vlgmr.msra.gmra.mrb[12].mxu1 %vm193_vm2, %v679_v63 }
 0x4cb   :  { %1682 = vmatpush3.bf16.msra.mxu1 %v790_v2  ;;  %1683 = vmatprep.mubr.msk.bf16.mxu1 %vm1859_vm1, %v1858_v15 }
 0x4cc   :  { %1693 = vmatprep.subr.bf16.mxu1 %v1858_v15 }
 0x4d5   :  { %1024 = vrot.lane.b32.xlu0 %v2001_v59, %s1864_s4 }
 0x50f   :  { %v647_v4 = vpop.xlane.xlu1 %646 }
 0x510   :  { %1818 = vrcp.f32 %v647_v4 }
 0x513   :  { %v650_v5 = vpop.xlane.xlu0 %649 }
 0x514   :  { %1820 = vrcp.f32 %v650_v5 }
 0x517   :  { %v653_v6 = vpop.xlane.xlu1 %652  ;;  %v929_v59 = vpop.permute.xlu0 %928 }
 0x518   :  { %1822 = vrcp.f32 %v653_v6  ;;  %v934_v19 = vsel %vm692_vm3, %v929_v59, 0 }
 0x51a   :  { %v1819_v7 = vpop.eup %1818 }
 0x51b   :  { %v673_v8 = vmul.f32 %v1819_v7, %v2087_v27 }
 0x51d   :  { %v681_v9 = vpack.c.bf16 %v673_v8, %v673_v8 }
 0x51e   :  { %v1821_v10 = vpop.eup %1820 }
 0x51f   :  { %v674_v12 = vmul.f32 %v1821_v10, %v2091_v30  ;;  %1684 = vmatmul.mubr.msk.bf16.vlgmr.msra.gmra.mrb[16].mxu1 %vm193_vm2, %v681_v9  ;;  %v659_v13 = vpop.xlane.xlu1 %658 }
 0x520   :  { %1694 = vmatpush3.bf16.msra.mxu1 %v886_v11  ;;  %1824 = vrcp.f32 %v659_v13  ;;  %1695 = vmatprep.mubr.msk.bf16.mxu1 %vm1859_vm1, %v1858_v15 }
 0x521   :  { %v682_v14 = vpack.c.bf16 %v674_v12, %v674_v12  ;;  %1705 = vmatprep.subr.bf16.mxu1 %v1858_v15 }
 0x522   :  { %v1823_v16 = vpop.eup %1822 }
 0x523   :  { %v675_v18 = vmul.f32 %v1823_v16, %v2096_v36  ;;  %1690 = vmatmul.mubr.msk.bf16.vlgmr.msra.gmra.mrb[28].mxu0 %vm193_vm2, %v682_v14  ;;  %v977_v50 = vpop.permute.xlu1 %976 }
 0x524   :  { %1700 = vmatpush3.bf16.msra.mxu0 %v934_v19  ;;  %1701 = vmatprep.mubr.msk.bf16.mxu0 %vm1859_vm1, %v1858_v15  ;;  %v982_v51 = vsel %vm692_vm3, %v977_v50, 0 }
 0x525   :  { %v683_v42 = vpack.c.bf16 %v675_v18, %v675_v18  ;;  %1711 = vmatprep.subr.bf16.mxu0 %v1858_v15 }
 0x527   :  { %1696 = vmatmul.mubr.msk.bf16.vlgmr.msra.gmra.mrb[20].mxu1 %vm193_vm2, %v683_v42 }
 0x528   :  { %1706 = vmatpush3.bf16.msra.mxu1 %v982_v51  ;;  %1707 = vmatprep.mubr.msk.bf16.mxu1 %vm1859_vm1, %v1858_v15 }
 0x529   :  { %1717 = vmatprep.subr.bf16.mxu1 %v1858_v15 }
 0x52a   :  { %v1825_v17 = vpop.eup %1824 }
 0x52b   :  { %v677_v20 = vmul.f32 %v1825_v17, %v2101_v38 }
 0x52d   :  { %v685_v21 = vpack.c.bf16 %v677_v20, %v677_v20 }
 0x52f   :  { %1708 = vmatmul.mubr.msk.bf16.vlgmr.msra.gmra.mrb[24].mxu1 %vm193_vm2, %v685_v21 }
 0x530   :  { %1721 = vmatprep.mubr.msk.bf16.mxu1 %vm1859_vm1, %v1858_v15  ;;  %1718 = vmatpush3.bf16.msra.mxu1 %v1770_v61  ;;  %v1788_v61 = vld [vmem:[%s2290_s11 + $0x68] sm:$0xff]  }
 0x531   :  { %1719 = vmatprep.subr.bf16.mxu1 %v1858_v15 }
 0x534   :  { %1720 = vmatpush3.bf16.msra.mxu1 %v1771_v62 }
 0x548   :  { %v656_v22 = vpop.xlane.xlu0 %655 }
 0x549   :  { %1826 = vrcp.f32 %v656_v22 }
 0x54c   :  { %v662_v23 = vpop.xlane.xlu0 %661 }
 0x54d   :  { %1828 = vrcp.f32 %v662_v23  ;;  %v1525_v23 = vld [vmem:[%s2285_s6] ss:$0 sm:$0xff] }
 0x550   :  { %v1025_v26 = vpop.permute.xlu0 %1024 }
 0x551   :  { %v1030_v29 = vsel %vm692_vm3, %v1025_v26, 0 }
 0x553   :  { %v1827_v24 = vpop.eup %1826 }
 0x554   :  { %v676_v25 = vmul.f32 %v1827_v24, %v2111_v49 }
 0x556   :  { %v684_v27 = vpack.c.bf16 %v676_v25, %v676_v25 }
 0x557   :  { %v1829_v28 = vpop.eup %1828 }
 0x558   :  { %1702 = vmatmul.mubr.msk.bf16.vlgmr.msra.gmra.mrb[32].mxu0 %vm193_vm2, %v684_v27  ;;  %v678_v54 = vmul.f32 %v1829_v28, %v2115_v55 }
 0x559   :  { %1712 = vmatpush3.bf16.msra.mxu0 %v1030_v29  ;;  %1713 = vmatprep.mubr.msk.bf16.mxu0 %vm1859_vm1, %v1858_v15 }
 0x55a   :  { %v686_v31 = vpack.c.bf16 %v678_v54, %v678_v54 }
 0x560   :  { %1714 = vmatmul.mubr.msk.bf16.vlgmr.msra.gmra.mrb[36].mxu0 %vm193_vm2, %v686_v31 }
 0x599   :  { %v778_v30 = vpop.f32.mrb[24].mxu0 }
 0x59a   :  { %v1679_v32 = vpop.f32.mrb[25].mxu0 }
 0x59b   :  { %v781_v33 = vpop.f32.mrb[26].mxu0 }
 0x59c   :  { %v1680_v34 = vpop.f32.mrb[27].mxu0 }
 0x59d   :  { %v730_v35 = vpop.f32.mrb[12].mxu1 }
 0x59e   :  { %v1673_v36 = vpop.f32.mrb[13].mxu1 }
 0x59f   :  { %v733_v37 = vpop.f32.mrb[14].mxu1 }
 0x5a0   :  { %v1674_v38 = vpop.f32.mrb[15].mxu1 }
 0x5f2   :  { %v826_v39 = vpop.f32.mrb[16].mxu1 }
 0x5f3   :  { %v1685_v40 = vpop.f32.mrb[17].mxu1 }
 0x5f4   :  { %v829_v41 = vpop.f32.mrb[18].mxu1 }
 0x5f5   :  { %v1686_v43 = vpop.f32.mrb[19].mxu1  ;;  %v1774_v41 = vld [vmem:[%s2288_s9 + $0x4] ss:$8 sps:$4 sm:$0xff]  }
 0x5f6   :  { %v874_v45 = vpop.f32.mrb[28].mxu0  ;;  %v1772_v43 = vld [vmem:[%s2288_s9] ss:$8 sps:$4 sm:$0xff]   ;;  %1258 = vmatprep.subr.bf16.mxu0 %v1774_v41 }
 0x5f7   :  { %v1753_v46 = vpack.i.bf16 %v874_v45, %v826_v39  ;;  %v1691_v47 = vpop.f32.mrb[29].mxu0  ;;  %1259 = vmatpush1.bf16.msra.mxu0 %v1772_v43  ;;  %v1775_v45 = vld [vmem:[%s2288_s9 + $0x10] ss:$8 sps:$4 sm:$0xff]  }
 0x5f8   :  { %v877_v48 = vpop.f32.mrb[30].mxu0  ;;  %v1868_v47 = vmov 0  }
 0x5f9   :  { %1754 = vrot.lane.b32.xlu1 %v1753_v46, %s1865_s22  ;;  %v1692_v49 = vpop.f32.mrb[31].mxu0  ;;  %v1777_v46 = vld [vmem:[%s2288_s9 + $0x14] ss:$8 sps:$4 sm:$0xff]   ;;  %1290 = vmatprep.mubr.bf16.mxu0 %v1868_v47  ;;  %v1778_v48 = vld [vmem:[%s2290_s11 + $0x40] sm:$0xff]  }
 0x5fa   :  { %v922_v52 = vpop.f32.mrb[20].mxu1  ;;  %1260 = vmatprep.subr.bf16.mxu0 %v1777_v46  ;;  %v1779_v49 = vld [vmem:[%s2290_s11] sm:$0xff]   ;;  %1591 = vmatprep.subr.bf16.mxu1 %v1778_v48 }
 0x5fb   :  { %v1697_v53 = vpop.f32.mrb[21].mxu1  ;;  %1261 = vmatpush1.bf16.msra.mxu0 %v1775_v45 }
 0x5fc   :  { %v925_v55 = vpop.f32.mrb[22].mxu1  ;;  %v1781_v53 = vld [vmem:[%s2290_s11 + $0x8] sm:$0xff]  }
 0x5fd   :  { %v1698_v60 = vpop.f32.mrb[23].mxu1  ;;  %v1782_v55 = vld [vmem:[%s2290_s11 + $0x50] sm:$0xff]  }
 0x5fe   :  { %v1783_v60 = vld [vmem:[%s2290_s11 + $0x10] sm:$0xff]  }
 0x602   :  { %v1018_v44 = vpop.f32.mrb[24].mxu1 }
 0x603   :  { %v1709_v56 = vpop.f32.mrb[25].mxu1 }
 0x604   :  { %v1021_v57 = vpop.f32.mrb[26].mxu1  ;;  %v1785_v56 = vld [vmem:[%s2290_s11 + $0x18] sm:$0xff]  }
 0x605   :  { %v1710_v58 = vpop.f32.mrb[27].mxu1  ;;  %v1786_v57 = vld [vmem:[%s2290_s11 + $0x60] sm:$0xff]  }
 0x606   :  { %v1787_v58 = vld [vmem:[%s2290_s11 + $0x20] sm:$0xff]  }
 0x62b   :  { %v970_v63 = vpop.f32.mrb[32].mxu0 }
 0x62c   :  { %v1758_v2 = vpack.i.bf16 %v970_v63, %v922_v52  ;;  %v1703_v3 = vpop.f32.mrb[33].mxu0  ;;  %v1780_v52 = vld [vmem:[%s2290_s11 + $0x48] sm:$0xff]  }
 0x62d   :  { %v973_v4 = vpop.f32.mrb[34].mxu0 }
 0x62e   :  { %1759 = vrot.lane.b32.xlu0 %v1758_v2, %s1866_s27  ;;  %v1704_v5 = vpop.f32.mrb[35].mxu0  ;;  %s1869_s27 = smov [#allocation2]  }
 0x633   :  { %v1066_v6 = vpop.f32.mrb[36].mxu0 }
 0x634   :  { %v1763_v7 = vpack.i.bf16 %v1066_v6, %v1018_v44  ;;  %v1715_v8 = vpop.f32.mrb[37].mxu0  ;;  %v1784_v44 = vld [vmem:[%s2290_s11 + $0x58] sm:$0xff]  }
 0x635   :  { %v1069_v9 = vpop.f32.mrb[38].mxu0  ;;  %v1529_v8 = vld [vmem:[%s2286_s7] ss:$0 sm:$0xff] }
 0x636   :  { %1764 = vrot.lane.b32.xlu1 %v1763_v7, %s1867_s28  ;;  %v1716_v10 = vpop.f32.mrb[39].mxu0  ;;  %s1492_s28 = sshll.u32 %s1869_s27, 4  ;;  %s1493_s28 = int_to_ptr.vmem [resolvable:$true] %s1492_s28 }
 0x637   :  { %s1834_s5 = scalar_lea.vmem %s1493_s28, 256  ;;  %p1839_p1 = scmp.lt.s32.totalorder %s1493_s28, %s1493_s28 }
 0x638   :  { %p1835_p0 = scmp.ne.s32.totalorder %s1493_s28, %s1834_s5  ;;  %p1840_p2 = scmp.lt.s32.totalorder %s1834_s5, %s1834_s5 }
 0x63a   :  { %p1841_p3 = por %p1840_p2, %p1839_p1 }
 0x63c   :  { %p1842_p4 = pnand %p1841_p3, %p1835_p0 }
 0x66b   :  { %v1755_v15 = vpop.permute.xlu1 %1754 }
 0x66c   :  { %v1757_v12 = vunpack.i.h.bf16 %v1755_v15  ;;  %v1756_v13 = vunpack.i.l.bf16 %v1755_v15 }
 0x66e   :  { %v1097_v18 = vsel %vm193_vm2, %v778_v30, %v1757_v12  ;;  %v1096_v19 = vsel %vm193_vm2, %v730_v35, %v1756_v13 }
 0x6a0   :  { %v1760_v11 = vpop.permute.xlu0 %1759 }
 0x6a1   :  { %v1762_v59 = vunpack.i.h.bf16 %v1760_v11  ;;  %v1761_v14 = vunpack.i.l.bf16 %v1760_v11  ;;  %v1530_v11 = vld [vmem:[%s2287_s8] ss:$0 sm:$0xff] }
 0x6a3   :  { %v1100_v51 = vsel %vm1098_vm4, %v1097_v18, %v1762_v59  ;;  %v1099_v17 = vsel %vm1098_vm4, %v1096_v19, %v1761_v14  ;;  %v1790_v18 = vld [vmem:[%s2290_s11 + $0x70] sm:$0xff]  }
 0x6a4   :  { %v1791_v19 = vld [vmem:[%s2290_s11 + $0x30] sm:$0xff]  }
 0x6a8   :  { %v1765_v16 = vpop.permute.xlu1 %1764 }
 0x6a9   :  { %v1767_v50 = vunpack.i.h.bf16 %v1765_v16  ;;  %v1766_v42 = vunpack.i.l.bf16 %v1765_v16  ;;  %v1789_v16 = vld [vmem:[%s2290_s11 + $0x28] sm:$0xff]  }
 0x6ab   :  { %v1103_v20 = vsel %vm1101_vm5, %v1100_v51, %v1767_v50  ;;  %v1102_v21 = vsel %vm1101_vm5, %v1099_v17, %v1766_v42  ;;  %v1792_v50 = vld [vmem:[%s2290_s11 + $0x78] sm:$0xff]   ;;  %v1225_v51 = vlaneseq }
 0x6ac   :  { %v1104_v22 = vpack.c.bf16 %v1103_v20, %v1102_v21  ;;  %v1793_v42 = vld [vmem:[%s2290_s11 + $0x38] sm:$0xff]   ;;  %v1223_v21 = vld [vmem:[%s2289_s10] sm:$0x3] }
 0x6ad   :  { %v1226_v17 = vshrl.u32 %v1225_v51, 7 }
 0x6ae   :  { %1722 = vmatmul.mubr.msk.bf16.vlgmr.msra.gmra.mrb[28].mxu1 %vm50_vm0, %v1104_v22 }
 0x6af   :  { %1592 = vmatpush3.bf16.msra.mxu1 %v1779_v49  ;;  %v1227_v20 = vsub.s32 0, %v1226_v17  ;;  %v1231_v22 = vsub.s32 1, %v1226_v17 }
 0x6b0   :  { %1593 = vmatprep.subr.bf16.mxu1 %v1780_v52 }
 0x6b3   :  { %1594 = vmatpush3.bf16.msra.mxu1 %v1781_v53 }
 0x6b4   :  { %1595 = vmatprep.subr.bf16.mxu1 %v1782_v55 }
 0x6b7   :  { %1596 = vmatpush3.bf16.msra.mxu1 %v1783_v60 }
 0x6b8   :  { %1597 = vmatprep.subr.bf16.mxu1 %v1784_v44 }
 0x6bb   :  { %1598 = vmatpush3.bf16.msra.mxu1 %v1785_v56 }
 0x6bc   :  { %1599 = vmatprep.subr.bf16.mxu1 %v1786_v57 }
 0x6bf   :  { %1600 = vmatpush3.bf16.msra.mxu1 %v1787_v58 }
 0x6c0   :  { %1601 = vmatprep.subr.bf16.mxu1 %v1788_v61 }
 0x6c3   :  { %1602 = vmatpush3.bf16.msra.mxu1 %v1789_v16 }
 0x6c4   :  { %1603 = vmatprep.subr.bf16.mxu1 %v1790_v18 }
 0x6c7   :  { %1604 = vmatpush3.bf16.msra.mxu1 %v1791_v19 }
 0x6c8   :  { %1605 = vmatprep.subr.bf16.mxu1 %v1792_v50 }
 0x6cb   :  { %1606 = vmatpush3.bf16.msra.mxu1 %v1793_v42 }
 0x781   :  { %v1165_v24 = vpop.f32.mrb[28].mxu1 }
 0x782   :  { %v1166_v25 = vadd.f32 %v1525_v23, %v1165_v24  ;;  %v1723_v26 = vpop.f32.mrb[29].mxu1  ;;  %v1232_v24 = vrot.slane %v1223_v21, %v1231_v22 }
 0x783   :  { %v1168_v27 = vpop.f32.mrb[30].mxu1 }
 0x784   :  { %v2176_v28 = vadd.f32 %v1166_v25, %v1944_v0  ;;  %v1169_v29 = vadd.f32 %v1525_v23, %v1168_v27  ;;  %v1724_v54 = vpop.f32.mrb[31].mxu1  ;;  %v1228_v23 = vrot.slane %v1223_v21, %v1227_v20 }
 0x786   :  { %v2179_v31 = vadd.f32 %v1169_v29, %v1949_v1  ;;  %v1176_v30 = vsel %vm50_vm0, %v2176_v28, 0.0 }
 0x787   :  { %1177 = vadd.xlane.f32.xlu0 %v1176_v30 }
 0x788   :  { %v1179_v32 = vsel %vm50_vm0, %v2179_v31, 0.0 }
 0x789   :  { %1180 = vadd.xlane.f32.xlu1 %v1179_v32 }
 0x814   :  { %v1178_v33 = vpop.xlane.xlu0 %1177 }
 0x815   :  { %v1182_v34 = vmul.f32 0.03125, %v1178_v33 }
 0x816   :  { %v1181_v35 = vpop.xlane.xlu1 %1180 }
 0x817   :  { %v1184_v36 = vsub.f32 %v2176_v28, %v1182_v34  ;;  %v1183_v0 = vmul.f32 0.03125, %v1181_v35 }
 0x819   :  { %v1185_v37 = vsub.f32 %v2179_v31, %v1183_v0  ;;  %v1186_v38 = vmul.f32 %v1184_v36, %v1184_v36 }
 0x81b   :  { %v1188_v1 = vsel %vm50_vm0, %v1186_v38, 0.0  ;;  %v1187_v39 = vmul.f32 %v1185_v37, %v1185_v37 }
 0x81c   :  { %1189 = vadd.xlane.f32.xlu0 %v1188_v1 }
 0x81d   :  { %v1191_v40 = vsel %vm50_vm0, %v1187_v39, 0.0  ;;  %v1536_v39 = vld [vmem:[%s2291_s12] ss:$0 sm:$0xff] }
 0x820   :  { %1192 = vadd.xlane.f32.xlu0 %v1191_v40 }
 0x8a9   :  { %v1190_v62 = vpop.xlane.xlu0 %1189 }
 0x8aa   :  { %v1194_v63 = vmul.f32 0.03125, %v1190_v62 }
 0x8ac   :  { %v1196_v2 = vadd.f32 1e-05, %v1194_v63 }
 0x8ad   :  { %v1193_v3 = vpop.xlane.xlu0 %1192 }
 0x8ae   :  { %1830 = vrsqrt.f32 %v1196_v2  ;;  %v1195_v4 = vmul.f32 0.03125, %v1193_v3 }
 0x8b0   :  { %v1197_v5 = vadd.f32 1e-05, %v1195_v4 }
 0x8b2   :  { %1832 = vrsqrt.f32 %v1197_v5 }
 0x8b8   :  { %v1831_v6 = vpop.eup %1830 }
 0x8b9   :  { %v1200_v7 = vmul.f32 %v1831_v6, %v1184_v36 }
 0x8bb   :  { %v1208_v10 = vmul.f32 %v1529_v8, %v1200_v7 }
 0x8bc   :  { %v1833_v9 = vpop.eup %1832 }
 0x8bd   :  { %v1201_v15 = vmul.f32 %v1833_v9, %v1185_v37  ;;  %v1216_v13 = vadd.f32 %v1530_v11, %v1208_v10 }
 0x8bf   :  { %v1209_v12 = vmul.f32 %v1529_v8, %v1201_v15 }
 0x8c1   :  { %v1217_v59 = vadd.f32 %v1530_v11, %v1209_v12 }
 0x8c3   :  { %v1218_v14 = vpack.c.bf16 %v1217_v59, %v1216_v13 }
 0x8c5   :  { %1535 = vmatmul.mubr.msk.bf16.vlgmr.msra.gmra.mrb[40].mxu0 %vm50_vm0, %v1218_v14 }
 0x998   :  { %v1292_v25 = vpop.f32.mrb[40].mxu0 }
 0x999   :  { %v1293_v26 = vadd.f32 %v1292_v25, %v1228_v23  ;;  %v1294_v27 = vpop.f32.mrb[41].mxu0 }
 0x99a   :  { %v1295_v29 = vadd.f32 %v1294_v27, %v1232_v24  ;;  %v1296_v54 = vpop.f32.mrb[42].mxu0 }
 0x99b   :  { %v1297_v30 = vadd.f32 %v1296_v54, %v1228_v23  ;;  %v1298_v32 = vpop.f32.mrb[43].mxu0  ;;  %v1301_v34 = vmax.f32 %v1293_v26, 0.0 }
 0x99c   :  { %v1299_v33 = vadd.f32 %v1298_v32, %v1232_v24  ;;  %v1302_v36 = vmax.f32 %v1295_v29, 0.0 }
 0x99d   :  { %v1303_v35 = vmax.f32 %v1297_v30, 0.0 }
 0x99e   :  { %v1304_v0 = vmax.f32 %v1299_v33, 0.0 }
 0x99f   :  { %v1305_v37 = vpack.c.bf16 %v1303_v35, %v1301_v34 }
 0x9a0   :  { %v1306_v38 = vpack.c.bf16 %v1304_v0, %v1302_v36 }
 0x9a2   :  { %1474 = vmatprep.mubr.bf16.mxu1 %v1306_v38 }
 0x9a3   :  { %1475 = vmatmul.mubr.bf16.vlgmr.msra.gmra.mrb[32].mxu1 %v1305_v37 }
 0xa76   :  { %v1607_v1 = vpop.f32.mrb[32].mxu1 }
 0xa77   :  { %v1608_v40 = vpop.f32.mrb[33].mxu1 }
 0xa78   :  { %v1609_v41 = vadd.f32 %v1608_v40, %v1607_v1  ;;  %v1610_v43 = vpop.f32.mrb[34].mxu1 }
 0xa79   :  { %v1611_v45 = vpop.f32.mrb[35].mxu1 }
 0xa7a   :  { %v1477_v46 = vadd.f32 %v1609_v41, %v1536_v39  ;;  %v1612_v47 = vadd.f32 %v1611_v45, %v1610_v43 }
 0xa7c   :  { %v1483_v48 = vadd.f32 %v1477_v46, %v2176_v28  ;;  %v1480_v49 = vadd.f32 %v1612_v47, %v1536_v39 }
 0xa7e   :  { %1485 = vst.msk [vmem:[#allocation2] sm:$0xff] %vm50_vm0, %v1483_v48  ;;  %v1484_v52 = vadd.f32 %v1480_v49, %v2179_v31 }
 0xa80   :  { %1486 = vst.msk [vmem:[#allocation2 + $0x8] sm:$0xff] %vm50_vm0, %v1484_v52 }
 0xa81   :  { %1845 = shalt.err (!%p1842_p4)
}
 0xa82   :  { %s1846_s6 = scalar_lea.hbm %s2292_s13, 256 }
 0xa83   :  { %p1847_p5 = scmp.ne.s32.totalorder %s2292_s13, %s1846_s6  ;;  %p1850_p6 = scmp.lt.u32.totalorder %s1846_s6, %s2292_s13 }
 0xa85   :  { %p1852_p7 = pnand %p1850_p6, %p1847_p5 }
 0xa87   :  { %1855 = shalt.err (!%p1852_p7)
}
 0xa88   :  { %s1870_s15 = smov 128  }
 0xa89   :  { %1498 = dma.vmem_to_hbm [thread:$0]  %s1493_s28, 256, %s2292_s13, [#allocation3], %s1870_s15, %s1870_s15, %s1865_s22  }
 0xa8a   :  { %1856 = dma.done.wait [#allocation3], 256  }
 0xa8b   :  { %1857 = vsyncadd [#allocation3], 4294967040 }
 0xa8c   :  { %1502 = vsyncpa [#allocation3], 1 }

</bundles_post_ra>
